<compile_context>
chip_gen: v5e
topology: v5e:2x2
jax: 0.10.0
libtpu: 0.0.40
codegen_flags: <defaults>
</compile_context>

<pallas_src>
import jax
import jax.numpy as jnp
import numpy as np
from jax import lax
from jax.experimental import pallas as pl
from jax.experimental.pallas import tpu as pltpu

LEAKY_SLOPE = 0.01  # torch.nn.functional.leaky_relu default


# ---------------------------------------------------------------------------
# Host-side weight preprocessing: banded (Toeplitz-over-width) matrices with
# the width zero-padding folded in (out-of-range kw taps stay zero).
#   width_major=False: rows indexed (ci*Win + wi)   -> conv1 (raw NCHW rows)
#   width_major=True : rows indexed (wi*Cin + ci)   -> conv2 (conv1-output rows)
# ---------------------------------------------------------------------------
def _band_weights(w_hwio, Win, Wo, pad, width_major):
    KH, KW, Cin, Cout = w_hwio.shape
    shape = (KH, Win, Cin, Wo, Cout) if width_major else (KH, Cin, Win, Wo, Cout)
    wb = jnp.zeros(shape, w_hwio.dtype)
    for kw in range(KW):
        for wo in range(Wo):
            wi = wo - pad + kw
            if 0 <= wi < Win:
                if width_major:
                    wb = wb.at[:, wi, :, wo, :].set(w_hwio[:, kw])
                else:
                    wb = wb.at[:, :, wi, wo, :].set(w_hwio[:, kw])
    return wb.reshape(KH, Win * Cin, Wo * Cout)


# ---------------------------------------------------------------------------
# Fused FocalConv2dBlock forward (NCHW in / NCHW out, like PyTorch)
# ---------------------------------------------------------------------------
def focal_conv2d_block(x_nchw, w1_oihw, w2_oihw, paddings, halving,
                       use_pool=True, compute_dtype=jnp.bfloat16,
                       batch_block=None):
    N, Cin, H, W = x_nchw.shape
    Cout = w1_oihw.shape[0]
    KH1, KW1 = int(w1_oihw.shape[2]), int(w1_oihw.shape[3])
    KH2, KW2 = int(w2_oihw.shape[2]), int(w2_oihw.shape[3])
    p1, p2 = paddings
    out_dtype = x_nchw.dtype

    # ----- focal split geometry (layer 1 splits input H, layer 2 splits the
    #       concatenated layer-1 output H), exactly like torch.split -----
    split1 = max(H // (2 ** halving), 1)
    # TODO(synk): ragged torch.split chunks (H % 2**halving != 0) not supported.
    assert H % split1 == 0, "ragged torch.split chunks not supported"
    nchunks1 = H // split1
    Hp1, Ho1 = split1 + 2 * p1, split1 + 2 * p1 - KH1 + 1
    Wo1 = W + 2 * p1 - KW1 + 1
    H1 = nchunks1 * Ho1

    split2 = max(H1 // (2 ** halving), 1)
    assert H1 % split2 == 0, "ragged torch.split chunks not supported"
    nchunks2 = H1 // split2
    Hp2, Ho2 = split2 + 2 * p2, split2 + 2 * p2 - KH2 + 1
    Wo2 = Wo1 + 2 * p2 - KW2 + 1
    H2 = nchunks2 * Ho2

    R1, L1 = Cin * W, Wo1 * Cout        # conv1 matmul: (M1, R1) x (R1, L1)
    R2 = Wo1 * Cout                     # conv2 matmul: (M2, R2) x (R2, L2u)

    # ----- batch blocking: stack B items (x chunks x rows) into one matmul M;
    #       keep >= 2 grid steps when possible so both v7x TensorCores get work ----
    if batch_block is None:
        rows_per_item = max(nchunks1 * Ho1, 1)
        B = max(1, -(-128 // rows_per_item))        # aim M >= 128
        if N >= 2:
            B = min(B, max(1, N // 2))              # >= 2 "parallel" grid steps
        B = min(B, N)
    else:
        B = int(batch_block)
    while N % B:
        B -= 1
    G = N // B

    Rows1 = B * nchunks1 * Hp1
    M1 = Rows1 - (KH1 - 1)
    Rows2 = B * nchunks2 * Hp2
    M2 = Rows2 - (KH2 - 1)

    # ----- banded weights (width padding folded in) -----
    w1_hwio = jnp.transpose(w1_oihw, (2, 3, 1, 0))   # OIHW -> HWIO
    w2_hwio = jnp.transpose(w2_oihw, (2, 3, 1, 0))
    wb1 = _band_weights(w1_hwio, W, Wo1, p1, width_major=False).astype(compute_dtype)
    wb2 = _band_weights(w2_hwio, Wo1, Wo2, p2, width_major=True)

    if use_pool:
        assert H2 >= 2 and Wo2 >= 2, "MaxPool2d(2) needs H,W >= 2"
        H2p, W2p = H2 // 2, Wo2 // 2
        half = W2p * Cout
        L2u = 2 * half
        # column order: even output-width positions first, odd second (drops the
        # leftover column when Wo2 is odd) -> width pooling = max of lane halves.
        cols = ([wo * Cout + c for wo in range(0, 2 * W2p, 2) for c in range(Cout)]
                + [wo * Cout + c for wo in range(1, 2 * W2p, 2) for c in range(Cout)])
        wb2 = wb2[:, :, jnp.asarray(cols, dtype=jnp.int32)]
        pack_pairs = (H2p % 2 == 0)                 # 2 pooled rows per 128-lane row
        out_rows = H2p // 2 if pack_pairs else H2p
        out_lanes = L2u if pack_pairs else half
    else:
        H2p = W2p = half = 0
        L2u = Wo2 * Cout
        pack_pairs = False
        out_rows, out_lanes = H2, L2u
    wb2 = wb2.astype(compute_dtype)

    # Input pre-arranged to (N, H, Cin*W): one dense, lane-aligned tile per item.
    x_rows = jnp.transpose(x_nchw, (0, 2, 1, 3)).reshape(N, H, R1)

    def kernel(x_ref, w1_ref, w2_ref, o_ref, pad1, y1s, pad2, y2s, *rest):
        z2v = rest[0] if use_pool else None

        # -- zero only the H-pad border rows (interiors are fully rewritten) --
        if p1 > 0:
            zr1 = jnp.zeros((p1, R1), pad1.dtype)
            for blk in range(B * nchunks1):
                base = blk * Hp1
                pad1[base:base + p1, :] = zr1
                pad1[base + p1 + split1:base + Hp1, :] = zr1
        if p2 > 0:
            zr2 = jnp.zeros((p2, R2), pad2.dtype)
            for blk in range(B * nchunks2):
                base = blk * Hp2
                pad2[base:base + p2, :] = zr2
                pad2[base + p2 + split2:base + Hp2, :] = zr2

        # -- stage x rows (full-width, lane-aligned copies) --
        for b in range(B):
            for c in range(nchunks1):
                dst = (b * nchunks1 + c) * Hp1 + p1
                pad1[dst:dst + split1, :] = x_ref[b, c * split1:(c + 1) * split1, :]

        # -- fconv1: one banded matmul per kh over ALL (item, chunk) rows --
        acc = jnp.dot(pad1[0:M1, :].astype(compute_dtype), w1_ref[0],
                      preferred_element_type=jnp.float32)
        for kh in range(1, KH1):
            acc = acc + jnp.dot(pad1[kh:kh + M1, :].astype(compute_dtype), w1_ref[kh],
                                preferred_element_type=jnp.float32)
        y1s[...] = jnp.maximum(acc, LEAKY_SLOPE * acc)        # leaky_relu (f32)

        # -- re-chunk fconv1 output into the padded conv2 staging buffer --
        for b in range(B):
            for c2 in range(nchunks2):
                dst0 = (b * nchunks2 + c2) * Hp2 + p2
                t0 = c2 * split2
                t = t0
                while t < t0 + split2:            # contiguous runs (static unroll)
                    c1, r = divmod(t, Ho1)
                    run = min(Ho1 - r, t0 + split2 - t)
                    src = (b * nchunks1 + c1) * Hp1 + r
                    pad2[dst0 + (t - t0):dst0 + (t - t0) + run, :] = y1s[src:src + run, :]
                    t += run

        # -- fconv2 --
        acc2 = jnp.dot(pad2[0:M2, :].astype(compute_dtype), w2_ref[0],
                       preferred_element_type=jnp.float32)
        for kh in range(1, KH2):
            acc2 = acc2 + jnp.dot(pad2[kh:kh + M2, :].astype(compute_dtype), w2_ref[kh],
                                  preferred_element_type=jnp.float32)
        y2s[...] = jnp.maximum(acc2, LEAKY_SLOPE * acc2)      # leaky_relu (f32)

        if use_pool:
            # Assemble valid rows contiguously per item (2x2 pool windows may
            # straddle chunk boundaries when Ho2 is odd).
            for b in range(B):
                for c2 in range(nchunks2):
                    src = (b * nchunks2 + c2) * Hp2
                    dst = b * H2 + c2 * Ho2
                    z2v[dst:dst + Ho2, :] = y2s[src:src + Ho2, :]
            if pack_pairs:
                lane = lax.broadcasted_iota(jnp.int32, (H2p // 2, L2u), 1)
                left = lane < half
            for b in range(B):
                if pack_pairs:
                    # pooled row 2i  (conv rows 4i, 4i+1)  -> lanes [0, half)
                    # pooled row 2i+1(conv rows 4i+2,4i+3) -> lanes [half, 2*half)
                    r0 = z2v[pl.ds(b * H2 + 0, H2p // 2, stride=4), :]
                    r1 = z2v[pl.ds(b * H2 + 1, H2p // 2, stride=4), :]
                    r2 = z2v[pl.ds(b * H2 + 2, H2p // 2, stride=4), :]
                    r3 = z2v[pl.ds(b * H2 + 3, H2p // 2, stride=4), :]
                    pA = jnp.maximum(r0, r1)
                    pB = jnp.maximum(r2, r3)
                    qA = jnp.maximum(pA, pltpu.roll(pA, shift=half, axis=1))
                    qB = jnp.maximum(pB, pltpu.roll(pB, shift=half, axis=1))
                    o_ref[b] = jnp.where(left, qA, qB).astype(o_ref.dtype)
                else:
                    ra = z2v[pl.ds(b * H2 + 0, H2p, stride=2), :]
                    rb = z2v[pl.ds(b * H2 + 1, H2p, stride=2), :]
                    rm = jnp.maximum(ra, rb)
                    o_ref[b] = jnp.maximum(rm[:, :half], rm[:, half:]).astype(o_ref.dtype)
        else:
            for b in range(B):
                for c2 in range(nchunks2):
                    src = (b * nchunks2 + c2) * Hp2
                    o_ref[b, c2 * Ho2:(c2 + 1) * Ho2, :] = (
                        y2s[src:src + Ho2, :].astype(o_ref.dtype))

    scratch = [
        pltpu.VMEM((Rows1, R1), jnp.float32),   # padded conv1 staging rows
        pltpu.VMEM((M1, L1), jnp.float32),      # fconv1 output (all stacked rows)
        pltpu.VMEM((Rows2, R2), jnp.float32),   # padded conv2 staging rows
        pltpu.VMEM((M2, L2u), jnp.float32),     # fconv2 output (all stacked rows)
    ]
    if use_pool:
        scratch.append(pltpu.VMEM((B * H2, L2u), jnp.float32))  # assembled conv2 rows

    out = pl.pallas_call(
        kernel,
        out_shape=jax.ShapeDtypeStruct((N, out_rows, out_lanes), out_dtype),
        grid=(G,),
        in_specs=[
            pl.BlockSpec((B, H, R1), lambda n: (n, 0, 0)),
            # constant index_map -> banded weights stay resident across grid steps
            pl.BlockSpec((KH1, R1, L1), lambda n: (0, 0, 0)),
            pl.BlockSpec((KH2, R2, L2u), lambda n: (0, 0, 0)),
        ],
        out_specs=pl.BlockSpec((B, out_rows, out_lanes), lambda n: (n, 0, 0)),
        scratch_shapes=scratch,
        compiler_params=pltpu.CompilerParams(
            dimension_semantics=("parallel",)),
    )(x_rows, wb1, wb2)

    if use_pool:
        out = out.reshape(N, H2p, W2p, Cout)     # un-packs the row pairs for free
    else:
        out = out.reshape(N, H2, Wo2, Cout)
    return jnp.transpose(out, (0, 3, 1, 2))      # -> NCHW


# ---------------------------------------------------------------------------
# Pure-JAX reference (for correctness check only).  compute_dtype mirrors the
# kernel's MXU operand dtype (f32 accumulation either way).
# ---------------------------------------------------------------------------
def _ref_focal_conv(x, w_oihw, halving, padding, compute_dtype):
    H = x.shape[2]
    split = max(H // (2 ** halving), 1)
    xc = x.astype(compute_dtype)
    wc = w_oihw.astype(compute_dtype)
    chunks = [xc[:, :, i * split:(i + 1) * split, :] for i in range(H // split)]
    outs = [lax.conv_general_dilated(
                c, wc, (1, 1), [(padding, padding), (padding, padding)],
                dimension_numbers=('NCHW', 'OIHW', 'NCHW'),
                preferred_element_type=jnp.float32)
            for c in chunks]
    z = jnp.concatenate(outs, axis=2)
    return jnp.maximum(z, LEAKY_SLOPE * z)


def _ref_block(x, w1, w2, paddings, halving, use_pool, compute_dtype=jnp.float32):
    x = _ref_focal_conv(x, w1, halving, paddings[0], compute_dtype)
    x = _ref_focal_conv(x, w2, halving, paddings[1], compute_dtype)
    if use_pool:
        x = lax.reduce_window(x, -jnp.inf, lax.max, (1, 1, 2, 2), (1, 1, 2, 2), 'VALID')
    return x


if __name__ == "__main__":
    # Module config: in=4, out=8, kernel_sizes=(3,3), paddings=(1,1), halving=1
    N, Cin, H, W = 2, 4, 16, 16
    Cout = 8
    paddings = (1, 1)
    halving = 1

    key = jax.random.PRNGKey(0)
    kx, k1, k2 = jax.random.split(key, 3)
    x = jax.random.normal(kx, (N, Cin, H, W), jnp.float32)
    w1 = jax.random.normal(k1, (Cout, Cin, 3, 3), jnp.float32) * 0.1
    w2 = jax.random.normal(k2, (Cout, Cout, 3, 3), jnp.float32) * 0.1

    # bf16-MXU path (default), use_pool=True
    out = jax.block_until_ready(
        focal_conv2d_block(x, w1, w2, paddings, halving, use_pool=True))
    ref = _ref_block(x, w1, w2, paddings, halving, True, jnp.bfloat16)
    np.testing.assert_allclose(np.asarray(out), np.asarray(ref), rtol=2e-2, atol=2e-2)
    assert out.shape == (N, Cout, H // 2, W // 2)

    # bf16-MXU path, use_pool=False
    out2 = jax.block_until_ready(
        focal_conv2d_block(x, w1, w2, paddings, halving, use_pool=False))
    ref2 = _ref_block(x, w1, w2, paddings, halving, False, jnp.bfloat16)
    np.testing.assert_allclose(np.asarray(out2), np.asarray(ref2), rtol=2e-2, atol=2e-2)

    # full-f32 path (exact PyTorch-style numerics)
    out3 = jax.block_until_ready(
        focal_conv2d_block(x, w1, w2, paddings, halving, use_pool=True,
                           compute_dtype=jnp.float32))
    ref3 = _ref_block(x, w1, w2, paddings, halving, True, jnp.float32)
    np.testing.assert_allclose(np.asarray(out3), np.asarray(ref3), rtol=1e-4, atol=1e-4)

    print("KERNEL_OK")
</pallas_src>

<mosaic_0001>
module attributes {stable_mosaic.version = 11 : i64} {
  func.func @kernel(%arg0: i32, %arg1: memref<1x16x64xf32, #tpu.memory_space<vmem>>, %arg2: memref<3x64x128xbf16, #tpu.memory_space<vmem>>, %arg3: memref<3x128x128xbf16, #tpu.memory_space<vmem>>, %arg4: memref<1x4x128xf32, #tpu.memory_space<vmem>>, %arg5: memref<20x64xf32, #tpu.memory_space<vmem>>, %arg6: memref<18x128xf32, #tpu.memory_space<vmem>>, %arg7: memref<20x128xf32, #tpu.memory_space<vmem>>, %arg8: memref<18x128xf32, #tpu.memory_space<vmem>>, %arg9: memref<16x128xf32, #tpu.memory_space<vmem>>) attributes {dimension_semantics = [#tpu.dimension_semantics<parallel>], iteration_bounds = array<i64: 2>, scalar_prefetch = 0 : i64, scratch_operands = 5 : i64, tpu.core_type = #tpu.core_type<tc>, window_params = [{transform_indices = @transform_0, window_bounds = array<i64: 1, 16, 64>}, {pipeline_mode = #tpu.pipeline_mode<synchronous>, transform_indices = @transform_1, window_bounds = array<i64: 3, 64, 128>}, {pipeline_mode = #tpu.pipeline_mode<synchronous>, transform_indices = @transform_2, window_bounds = array<i64: 3, 128, 128>}, {transform_indices = @transform_3, window_bounds = array<i64: 1, 4, 128>}]} {
    %cst = arith.constant 0.000000e+00 : f32
    %0 = vector.broadcast %cst : f32 to vector<1x64xf32>
    %c0 = arith.constant 0 : index
    %c0_0 = arith.constant 0 : index
    %1 = vector.load %arg5[%c0, %c0_0] : memref<20x64xf32, #tpu.memory_space<vmem>>, vector<1x64xf32>
    tpu.vector_store %arg5[%c0, %c0_0], %0 {strides = array<i32>} : memref<20x64xf32, #tpu.memory_space<vmem>>, vector<1x64xf32>,
    %c9 = arith.constant 9 : index
    %c0_1 = arith.constant 0 : index
    %2 = vector.load %arg5[%c9, %c0_1] : memref<20x64xf32, #tpu.memory_space<vmem>>, vector<1x64xf32>
    tpu.vector_store %arg5[%c9, %c0_1], %0 {strides = array<i32>} : memref<20x64xf32, #tpu.memory_space<vmem>>, vector<1x64xf32>,
    %c10 = arith.constant 10 : index
    %c0_2 = arith.constant 0 : index
    %3 = vector.load %arg5[%c10, %c0_2] : memref<20x64xf32, #tpu.memory_space<vmem>>, vector<1x64xf32>
    tpu.vector_store %arg5[%c10, %c0_2], %0 {strides = array<i32>} : memref<20x64xf32, #tpu.memory_space<vmem>>, vector<1x64xf32>,
    %c19 = arith.constant 19 : index
    %c0_3 = arith.constant 0 : index
    %4 = vector.load %arg5[%c19, %c0_3] : memref<20x64xf32, #tpu.memory_space<vmem>>, vector<1x64xf32>
    tpu.vector_store %arg5[%c19, %c0_3], %0 {strides = array<i32>} : memref<20x64xf32, #tpu.memory_space<vmem>>, vector<1x64xf32>,
    %cst_4 = arith.constant 0.000000e+00 : f32
    %5 = vector.broadcast %cst_4 : f32 to vector<1x128xf32>
    %c0_5 = arith.constant 0 : index
    %c0_6 = arith.constant 0 : index
    %6 = vector.load %arg7[%c0_5, %c0_6] : memref<20x128xf32, #tpu.memory_space<vmem>>, vector<1x128xf32>
    tpu.vector_store %arg7[%c0_5, %c0_6], %5 {strides = array<i32>} : memref<20x128xf32, #tpu.memory_space<vmem>>, vector<1x128xf32>,
    %c9_7 = arith.constant 9 : index
    %c0_8 = arith.constant 0 : index
    %7 = vector.load %arg7[%c9_7, %c0_8] : memref<20x128xf32, #tpu.memory_space<vmem>>, vector<1x128xf32>
    tpu.vector_store %arg7[%c9_7, %c0_8], %5 {strides = array<i32>} : memref<20x128xf32, #tpu.memory_space<vmem>>, vector<1x128xf32>,
    %c10_9 = arith.constant 10 : index
    %c0_10 = arith.constant 0 : index
    %8 = vector.load %arg7[%c10_9, %c0_10] : memref<20x128xf32, #tpu.memory_space<vmem>>, vector<1x128xf32>
    tpu.vector_store %arg7[%c10_9, %c0_10], %5 {strides = array<i32>} : memref<20x128xf32, #tpu.memory_space<vmem>>, vector<1x128xf32>,
    %c19_11 = arith.constant 19 : index
    %c0_12 = arith.constant 0 : index
    %9 = vector.load %arg7[%c19_11, %c0_12] : memref<20x128xf32, #tpu.memory_space<vmem>>, vector<1x128xf32>
    tpu.vector_store %arg7[%c19_11, %c0_12], %5 {strides = array<i32>} : memref<20x128xf32, #tpu.memory_space<vmem>>, vector<1x128xf32>,
    %c0_13 = arith.constant 0 : index
    %c0_14 = arith.constant 0 : index
    %c0_15 = arith.constant 0 : index
    %10 = vector.load %arg1[%c0_13, %c0_14, %c0_15] : memref<1x16x64xf32, #tpu.memory_space<vmem>>, vector<1x8x64xf32>
    %11 = vector.shape_cast %10 : vector<1x8x64xf32> to vector<8x64xf32>
    %c1 = arith.constant 1 : index
    %c0_16 = arith.constant 0 : index
    %12 = vector.load %arg5[%c1, %c0_16] : memref<20x64xf32, #tpu.memory_space<vmem>>, vector<8x64xf32>
    tpu.vector_store %arg5[%c1, %c0_16], %11 {strides = array<i32>} : memref<20x64xf32, #tpu.memory_space<vmem>>, vector<8x64xf32>,
    %c0_17 = arith.constant 0 : index
    %c8 = arith.constant 8 : index
    %c0_18 = arith.constant 0 : index
    %13 = vector.load %arg1[%c0_17, %c8, %c0_18] : memref<1x16x64xf32, #tpu.memory_space<vmem>>, vector<1x8x64xf32>
    %14 = vector.shape_cast %13 : vector<1x8x64xf32> to vector<8x64xf32>
    %c11 = arith.constant 11 : index
    %c0_19 = arith.constant 0 : index
    %15 = vector.load %arg5[%c11, %c0_19] : memref<20x64xf32, #tpu.memory_space<vmem>>, vector<8x64xf32>
    tpu.vector_store %arg5[%c11, %c0_19], %14 {strides = array<i32>} : memref<20x64xf32, #tpu.memory_space<vmem>>, vector<8x64xf32>,
    %c0_20 = arith.constant 0 : index
    %c0_21 = arith.constant 0 : index
    %16 = vector.load %arg5[%c0_20, %c0_21] : memref<20x64xf32, #tpu.memory_space<vmem>>, vector<18x64xf32>
    %17 = arith.truncf %16 : vector<18x64xf32> to vector<18x64xbf16>
    %c0_22 = arith.constant 0 : index
    %c0_23 = arith.constant 0 : index
    %c0_24 = arith.constant 0 : index
    %18 = vector.load %arg2[%c0_22, %c0_23, %c0_24] : memref<3x64x128xbf16, #tpu.memory_space<vmem>>, vector<1x64x128xbf16>
    %19 = vector.shape_cast %18 : vector<1x64x128xbf16> to vector<64x128xbf16>
    %cst_25 = arith.constant dense<0.000000e+00> : vector<18x128xf32>
    %20 = tpu.matmul %17, %19, %cst_25 {dimension_numbers = #tpu.dot_dimension_numbers<[1], [0], [0], [1], [0, 0, 1, 1], [], []>} : vector<18x64xbf16>, vector<64x128xbf16>, vector<18x128xf32> -> vector<18x128xf32>
    %c1_26 = arith.constant 1 : index
    %c0_27 = arith.constant 0 : index
    %21 = vector.load %arg5[%c1_26, %c0_27] : memref<20x64xf32, #tpu.memory_space<vmem>>, vector<18x64xf32>
    %22 = arith.truncf %21 : vector<18x64xf32> to vector<18x64xbf16>
    %c1_28 = arith.constant 1 : index
    %c0_29 = arith.constant 0 : index
    %c0_30 = arith.constant 0 : index
    %23 = vector.load %arg2[%c1_28, %c0_29, %c0_30] : memref<3x64x128xbf16, #tpu.memory_space<vmem>>, vector<1x64x128xbf16>
    %24 = vector.shape_cast %23 : vector<1x64x128xbf16> to vector<64x128xbf16>
    %cst_31 = arith.constant dense<0.000000e+00> : vector<18x128xf32>
    %25 = tpu.matmul %22, %24, %cst_31 {dimension_numbers = #tpu.dot_dimension_numbers<[1], [0], [0], [1], [0, 0, 1, 1], [], []>} : vector<18x64xbf16>, vector<64x128xbf16>, vector<18x128xf32> -> vector<18x128xf32>
    %26 = arith.addf %20, %25 : vector<18x128xf32>
    %c2 = arith.constant 2 : index
    %c0_32 = arith.constant 0 : index
    %27 = vector.load %arg5[%c2, %c0_32] : memref<20x64xf32, #tpu.memory_space<vmem>>, vector<18x64xf32>
    %28 = arith.truncf %27 : vector<18x64xf32> to vector<18x64xbf16>
    %c2_33 = arith.constant 2 : index
    %c0_34 = arith.constant 0 : index
    %c0_35 = arith.constant 0 : index
    %29 = vector.load %arg2[%c2_33, %c0_34, %c0_35] : memref<3x64x128xbf16, #tpu.memory_space<vmem>>, vector<1x64x128xbf16>
    %30 = vector.shape_cast %29 : vector<1x64x128xbf16> to vector<64x128xbf16>
    %cst_36 = arith.constant dense<0.000000e+00> : vector<18x128xf32>
    %31 = tpu.matmul %28, %30, %cst_36 {dimension_numbers = #tpu.dot_dimension_numbers<[1], [0], [0], [1], [0, 0, 1, 1], [], []>} : vector<18x64xbf16>, vector<64x128xbf16>, vector<18x128xf32> -> vector<18x128xf32>
    %32 = arith.addf %26, %31 : vector<18x128xf32>
    %cst_37 = arith.constant 0.00999999977 : f32
    %33 = vector.broadcast %cst_37 : f32 to vector<18x128xf32>
    %34 = arith.mulf %33, %32 : vector<18x128xf32>
    %35 = arith.maximumf %32, %34 : vector<18x128xf32>
    %c0_38 = arith.constant 0 : index
    %c0_39 = arith.constant 0 : index
    %36 = vector.load %arg6[%c0_38, %c0_39] : memref<18x128xf32, #tpu.memory_space<vmem>>, vector<18x128xf32>
    tpu.vector_store %arg6[%c0_38, %c0_39], %35 {strides = array<i32>} : memref<18x128xf32, #tpu.memory_space<vmem>>, vector<18x128xf32>,
    %c0_40 = arith.constant 0 : index
    %c0_41 = arith.constant 0 : index
    %37 = vector.load %arg6[%c0_40, %c0_41] : memref<18x128xf32, #tpu.memory_space<vmem>>, vector<8x128xf32>
    %c1_42 = arith.constant 1 : index
    %c0_43 = arith.constant 0 : index
    %38 = vector.load %arg7[%c1_42, %c0_43] : memref<20x128xf32, #tpu.memory_space<vmem>>, vector<8x128xf32>
    tpu.vector_store %arg7[%c1_42, %c0_43], %37 {strides = array<i32>} : memref<20x128xf32, #tpu.memory_space<vmem>>, vector<8x128xf32>,
    %c10_44 = arith.constant 10 : index
    %c0_45 = arith.constant 0 : index
    %39 = vector.load %arg6[%c10_44, %c0_45] : memref<18x128xf32, #tpu.memory_space<vmem>>, vector<8x128xf32>
    %c11_46 = arith.constant 11 : index
    %c0_47 = arith.constant 0 : index
    %40 = vector.load %arg7[%c11_46, %c0_47] : memref<20x128xf32, #tpu.memory_space<vmem>>, vector<8x128xf32>
    tpu.vector_store %arg7[%c11_46, %c0_47], %39 {strides = array<i32>} : memref<20x128xf32, #tpu.memory_space<vmem>>, vector<8x128xf32>,
    %c0_48 = arith.constant 0 : index
    %c0_49 = arith.constant 0 : index
    %41 = vector.load %arg7[%c0_48, %c0_49] : memref<20x128xf32, #tpu.memory_space<vmem>>, vector<18x128xf32>
    %42 = arith.truncf %41 : vector<18x128xf32> to vector<18x128xbf16>
    %c0_50 = arith.constant 0 : index
    %c0_51 = arith.constant 0 : index
    %c0_52 = arith.constant 0 : index
    %43 = vector.load %arg3[%c0_50, %c0_51, %c0_52] : memref<3x128x128xbf16, #tpu.memory_space<vmem>>, vector<1x128x128xbf16>
    %44 = vector.shape_cast %43 : vector<1x128x128xbf16> to vector<128x128xbf16>
    %cst_53 = arith.constant dense<0.000000e+00> : vector<18x128xf32>
    %45 = tpu.matmul %42, %44, %cst_53 {dimension_numbers = #tpu.dot_dimension_numbers<[1], [0], [0], [1], [0, 0, 1, 1], [], []>} : vector<18x128xbf16>, vector<128x128xbf16>, vector<18x128xf32> -> vector<18x128xf32>
    %c1_54 = arith.constant 1 : index
    %c0_55 = arith.constant 0 : index
    %46 = vector.load %arg7[%c1_54, %c0_55] : memref<20x128xf32, #tpu.memory_space<vmem>>, vector<18x128xf32>
    %47 = arith.truncf %46 : vector<18x128xf32> to vector<18x128xbf16>
    %c1_56 = arith.constant 1 : index
    %c0_57 = arith.constant 0 : index
    %c0_58 = arith.constant 0 : index
    %48 = vector.load %arg3[%c1_56, %c0_57, %c0_58] : memref<3x128x128xbf16, #tpu.memory_space<vmem>>, vector<1x128x128xbf16>
    %49 = vector.shape_cast %48 : vector<1x128x128xbf16> to vector<128x128xbf16>
    %cst_59 = arith.constant dense<0.000000e+00> : vector<18x128xf32>
    %50 = tpu.matmul %47, %49, %cst_59 {dimension_numbers = #tpu.dot_dimension_numbers<[1], [0], [0], [1], [0, 0, 1, 1], [], []>} : vector<18x128xbf16>, vector<128x128xbf16>, vector<18x128xf32> -> vector<18x128xf32>
    %51 = arith.addf %45, %50 : vector<18x128xf32>
    %c2_60 = arith.constant 2 : index
    %c0_61 = arith.constant 0 : index
    %52 = vector.load %arg7[%c2_60, %c0_61] : memref<20x128xf32, #tpu.memory_space<vmem>>, vector<18x128xf32>
    %53 = arith.truncf %52 : vector<18x128xf32> to vector<18x128xbf16>
    %c2_62 = arith.constant 2 : index
    %c0_63 = arith.constant 0 : index
    %c0_64 = arith.constant 0 : index
    %54 = vector.load %arg3[%c2_62, %c0_63, %c0_64] : memref<3x128x128xbf16, #tpu.memory_space<vmem>>, vector<1x128x128xbf16>
    %55 = vector.shape_cast %54 : vector<1x128x128xbf16> to vector<128x128xbf16>
    %cst_65 = arith.constant dense<0.000000e+00> : vector<18x128xf32>
    %56 = tpu.matmul %53, %55, %cst_65 {dimension_numbers = #tpu.dot_dimension_numbers<[1], [0], [0], [1], [0, 0, 1, 1], [], []>} : vector<18x128xbf16>, vector<128x128xbf16>, vector<18x128xf32> -> vector<18x128xf32>
    %57 = arith.addf %51, %56 : vector<18x128xf32>
    %cst_66 = arith.constant 0.00999999977 : f32
    %58 = vector.broadcast %cst_66 : f32 to vector<18x128xf32>
    %59 = arith.mulf %58, %57 : vector<18x128xf32>
    %60 = arith.maximumf %57, %59 : vector<18x128xf32>
    %c0_67 = arith.constant 0 : index
    %c0_68 = arith.constant 0 : index
    %61 = vector.load %arg8[%c0_67, %c0_68] : memref<18x128xf32, #tpu.memory_space<vmem>>, vector<18x128xf32>
    tpu.vector_store %arg8[%c0_67, %c0_68], %60 {strides = array<i32>} : memref<18x128xf32, #tpu.memory_space<vmem>>, vector<18x128xf32>,
    %c0_69 = arith.constant 0 : index
    %c0_70 = arith.constant 0 : index
    %62 = vector.load %arg8[%c0_69, %c0_70] : memref<18x128xf32, #tpu.memory_space<vmem>>, vector<8x128xf32>
    %c0_71 = arith.constant 0 : index
    %c0_72 = arith.constant 0 : index
    %63 = vector.load %arg9[%c0_71, %c0_72] : memref<16x128xf32, #tpu.memory_space<vmem>>, vector<8x128xf32>
    tpu.vector_store %arg9[%c0_71, %c0_72], %62 {strides = array<i32>} : memref<16x128xf32, #tpu.memory_space<vmem>>, vector<8x128xf32>,
    %c10_73 = arith.constant 10 : index
    %c0_74 = arith.constant 0 : index
    %64 = vector.load %arg8[%c10_73, %c0_74] : memref<18x128xf32, #tpu.memory_space<vmem>>, vector<8x128xf32>
    %c8_75 = arith.constant 8 : index
    %c0_76 = arith.constant 0 : index
    %65 = vector.load %arg9[%c8_75, %c0_76] : memref<16x128xf32, #tpu.memory_space<vmem>>, vector<8x128xf32>
    tpu.vector_store %arg9[%c8_75, %c0_76], %64 {strides = array<i32>} : memref<16x128xf32, #tpu.memory_space<vmem>>, vector<8x128xf32>,
    %66 = tpu.iota {dimensions = array<i32: 1>} : vector<4x128xi32>
    %c64_i32 = arith.constant 64 : i32
    %67 = vector.broadcast %c64_i32 : i32 to vector<4x128xi32>
    %68 = arith.cmpi slt, %66, %67 : vector<4x128xi32>
    %c0_77 = arith.constant 0 : index
    %c0_78 = arith.constant 0 : index
    %69 = tpu.strided_load %arg9[%c0_77, %c0_78] {strides = array<i32: 4, 1>} : memref<16x128xf32, #tpu.memory_space<vmem>>, vector<4x128xf32>
    %c1_79 = arith.constant 1 : index
    %c0_80 = arith.constant 0 : index
    %70 = tpu.strided_load %arg9[%c1_79, %c0_80] {strides = array<i32: 4, 1>} : memref<16x128xf32, #tpu.memory_space<vmem>>, vector<4x128xf32>
    %c2_81 = arith.constant 2 : index
    %c0_82 = arith.constant 0 : index
    %71 = tpu.strided_load %arg9[%c2_81, %c0_82] {strides = array<i32: 4, 1>} : memref<16x128xf32, #tpu.memory_space<vmem>>, vector<4x128xf32>
    %c3 = arith.constant 3 : index
    %c0_83 = arith.constant 0 : index
    %72 = tpu.strided_load %arg9[%c3, %c0_83] {strides = array<i32: 4, 1>} : memref<16x128xf32, #tpu.memory_space<vmem>>, vector<4x128xf32>
    %73 = arith.maximumf %69, %70 : vector<4x128xf32>
    %74 = arith.maximumf %71, %72 : vector<4x128xf32>
    %c64_i32_84 = arith.constant 64 : i32
    %75 = tpu.dynamic_rotate %73 by %c64_i32_84 dim 1 : vector<4x128xf32>, i32 -> vector<4x128xf32>
    %76 = arith.maximumf %73, %75 : vector<4x128xf32>
    %c64_i32_85 = arith.constant 64 : i32
    %77 = tpu.dynamic_rotate %74 by %c64_i32_85 dim 1 : vector<4x128xf32>, i32 -> vector<4x128xf32>
    %78 = arith.maximumf %74, %77 : vector<4x128xf32>
    %79 = arith.select %68, %76, %78 : vector<4x128xi1>, vector<4x128xf32>
    %c0_86 = arith.constant 0 : index
    %c0_87 = arith.constant 0 : index
    %c0_88 = arith.constant 0 : index
    %80 = vector.load %arg4[%c0_86, %c0_87, %c0_88] : memref<1x4x128xf32, #tpu.memory_space<vmem>>, vector<1x4x128xf32>
    %81 = vector.shape_cast %80 : vector<1x4x128xf32> to vector<4x128xf32>
    %82 = vector.shape_cast %79 : vector<4x128xf32> to vector<1x4x128xf32>
    tpu.vector_store %arg4[%c0_86, %c0_87, %c0_88], %82 {strides = array<i32>} : memref<1x4x128xf32, #tpu.memory_space<vmem>>, vector<1x4x128xf32>,
    return
  }
  func.func @transform_0(%arg0: i32) -> (i32, i32, i32) {
    %c0_i32 = arith.constant 0 : i32
    %c0_i32_0 = arith.constant 0 : i32
    %c0_i32_1 = arith.constant 0 : i32
    return %arg0, %c0_i32, %c0_i32_0 : i32, i32, i32
  }
  func.func @transform_1(%arg0: i32) -> (i32, i32, i32) {
    %c0_i32 = arith.constant 0 : i32
    %c0_i32_0 = arith.constant 0 : i32
    %c0_i32_1 = arith.constant 0 : i32
    %c0_i32_2 = arith.constant 0 : i32
    return %c0_i32, %c0_i32_0, %c0_i32_1 : i32, i32, i32
  }
  func.func @transform_2(%arg0: i32) -> (i32, i32, i32) {
    %c0_i32 = arith.constant 0 : i32
    %c0_i32_0 = arith.constant 0 : i32
    %c0_i32_1 = arith.constant 0 : i32
    %c0_i32_2 = arith.constant 0 : i32
    return %c0_i32, %c0_i32_0, %c0_i32_1 : i32, i32, i32
  }
  func.func @transform_3(%arg0: i32) -> (i32, i32, i32) {
    %c0_i32 = arith.constant 0 : i32
    %c0_i32_0 = arith.constant 0 : i32
    %c0_i32_1 = arith.constant 0 : i32
    return %arg0, %c0_i32, %c0_i32_0 : i32, i32, i32
  }
}

</mosaic_0001>

<bundles_post_ra>
// kernel: tpu_custom_call.1
= control target key start
LH: loop header
LB: loop body
LE: loop exit
PB: predicated region body
PF: predicated region fallthrough
CT: control target
= control target key end

     0   :  { %8 = vsyncpa [#allocation8], 0  ;;  %s1469_s0 = inlined_call_operand.hbm [shape: f32[2,16,64], index: 0, kind: input, shape index: {}]   ;;  %s1470_s1 = inlined_call_operand.hbm [shape: bf16[3,64,128], index: 1, kind: input, shape index: {}]   ;;  %s1471_s2 = inlined_call_operand.hbm [shape: bf16[3,128,128], index: 2, kind: input, shape index: {}]   ;;  %s1472_s3 = inlined_call_operand.hbm [shape: f32[2,4,128], index: 3, kind: output, shape index: {}]  }
   0x1   :  { %10 = vsyncpa [#allocation8 + $0x1], 0 }
   0x2   :  { %11 = vsyncpa [#allocation11], 0 }
   0x3   :  { %12 = vsyncpa [#allocation9], 0 }
   0x4   :  { %14 = vsyncpa [#allocation9 + $0x1], 0  ;;  %s1319_s12 = smov 0   ;;  %s1321_s13 = smov 0  }
   0x5   :  { %s1323_s14 = smov 0   ;;  %s1325_s15 = smov 0  }
   0x6 LB: > { %s1340_s16 = sadd.s32 4294967295, %s1289_s15   ;;  %s844_s17 = sadd.s32 4294967294, %s1289_s15   ;;  %s1289_s15 = sphi %s1325_s15, %s1482_s15   ;;  %s1285_s14 = sphi %s1323_s14, %s1481_s14   ;;  %s1281_s13 = sphi %s1321_s13, %s1480_s13   ;;  %s1277_s12 = sphi %s1319_s12, %s1479_s12  }
   0x7   : > { %p40_p0 = scmp.ne.s32.totalorder %s1281_s13, %s1277_s12  ;;  %p41_p1 = scmp.eq.s32.totalorder %s1340_s16, 0 }
   0x8   : > { %p106_p2 = scmp.eq.s32.totalorder %s1340_s16, 1  ;;  %p112_p3 = scmp.eq.s32.totalorder %s844_s17, 1 }
   0x9   : > { %p1349_p4 = por %p41_p1, %p40_p0  ;;  %p845_p5 = scmp.ge.s32.totalorder %s1289_s15, 1 }
   0xa   : > { %p1354_p6 = por %p112_p3, %p40_p0  ;;  %p119_p7 = scmp.lt.s32.totalorder %s1289_s15, 3 }
   0xb   : > { %s130_s22 = sshll.u32 %s1470_s1, 4  ;;  %s1291_s24 = smov [#allocation10]   ;;  %s131_s22 = int_to_ptr.hbm [resolvable:$true] %s130_s22 }
   0xc   : > { %p1362_p8 = pnand %p845_p5, %p119_p7  ;;  %s132_s25 = sshll.u32 %s1291_s24, 4  ;;  %s133_s25 = int_to_ptr.vmem [resolvable:$true] %s132_s25 }
   0xd   : > { %s144_s28 = sshll.u32 %s1471_s2, 4  ;;  %s1292_s29 = smov 64   ;;  %s145_s28 = int_to_ptr.hbm [resolvable:$true] %s144_s28 }
   0xe   : > { %p1068_p9 = pneg %p1362_p8  ;;  %s1293_s30 = smov 4  }
   0xf   : > { %s1294_s4 = smov [#allocation12]   ;;  %s1375_s6 = sadd.s32 1, %s1289_s15  }
  0x10   : > { %p1069_p10 = pnand %p1068_p9, %p41_p1  ;;  %s146_s5 = sshll.u32 %s1294_s4, 4  ;;  %s147_s5 = int_to_ptr.vmem [resolvable:$true] %s146_s5 }
  0x11   : > { %s27_s7 = sadd.s32 1, %s1285_s14  ;;  %s24_s8 = ssub.s32 %s1289_s15, %s1375_s6 }
  0x12   : > { %1071 = dma.hbm_to_vmem [thread:$0]  (!%p1069_p10), %s131_s22, 1536, %s133_s25, [#allocation11], %s1292_s29, %s1292_s29, %s1293_s30  }
  0x13   : > { %1074 = dma.hbm_to_vmem [thread:$0]  (!%p1069_p10), %s145_s28, 3072, %s147_s5, [#allocation11], %s1292_s29, %s1292_s29, %s1293_s30  }
  0x14   : > { %p34_p12 = scmp.ne.s32.totalorder %s1285_s14, %s1281_s13  ;;  %p25_p13 = scmp.eq.s32.totalorder %s24_s8, 0 }
  0x15   : > { %p35_p0 = scmp.eq.s32.totalorder %s1289_s15, 0  ;;  %p1085_p5 = scmp.lt.s32.totalorder %s1289_s15, 2 }
  0x16   : > { %p1385_p3 = por %p106_p2, %p34_p12  ;;  %s160_s11 = sand.u32 1, %s1285_s14  }
  0x17   : > { %s1391_s10 = scalar_select %p25_p13, %s1285_s14, %s27_s7  }
  0x18   : > { %p36_p7 = por %p35_p0, %p34_p12  ;;  %s849_s17 = sshll.u32 %s160_s11, 4 }
  0x19   : > { %s1011_s20 = sshll.u32 %s1289_s15, 4  ;;  %s164_s25 = scalar_lea.vmem [#allocation7], %s849_s17 }
  0x1a   : > { %s169_s24 = scalar_lea.hbm %s1469_s0, %s1011_s20  ;;  %s172_s26 = sshll.u32 %s164_s25, 4  ;;  %s173_s26 = int_to_ptr.vmem [resolvable:$true] %s172_s26 }
  0x1b   : > { %s170_s27 = sshll.u32 %s169_s24, 4  ;;  %p1398_p2 = pnand %p1085_p5, %p36_p7  ;;  %s171_s27 = int_to_ptr.hbm [resolvable:$true] %s170_s27 }
  0x1c   : > { %s161_s29 = scalar_lea.sflag [#allocation8], %s160_s11  ;;  %s1189_s30 = sshra.s32 %s171_s27, 4  ;;  %s1190_s30 = int_to_ptr.hbm [resolvable:$true] %s1189_s30 }
  0x1d   : > { %s1191_s4 = scalar_lea.hbm %s1190_s30, 16  ;;  %p1193_p10 = pneg %p1398_p2 }
  0x1e   : > { %p1192_p9 = scmp.ne.s32.totalorder %s1190_s30, %s1191_s4  ;;  %s1196_s8 = scalar_lea.hbm %s1469_s0, 32 }
  0x1f   : > { %p1197_p0 = scmp.lt.s32.totalorder %s1190_s30, %s1469_s0  ;;  %p1198_p5 = scmp.lt.s32.totalorder %s1196_s8, %s1191_s4 }
  0x20   : > { %p1194_p12 = pnand %p1193_p10, %p1192_p9 }
  0x21   : > { %p1199_p7 = por %p1198_p5, %p1197_p0 }
  0x22   : > { %p1195_p13 = pneg %p1194_p12 }
  0x24   : > { %p1200_p11 = pnand %p1199_p7, %p1195_p13 }
  0x26   : > { %1203 = shalt.err (!%p1200_p11)
}
  0x27   : > { %s1295_s11 = smov 128   ;;  %s1296_s21 = smov 8  }
  0x28   : > { %1078 = dma.hbm_to_vmem [thread:$0]  (!%p1398_p2), %s171_s27, 256, %s173_s26, %s161_s29, %s1295_s11, %s1295_s11, %s1296_s21  }
  0x29   : > { %184 = sbr.rel (%p1362_p8) target bundleno = 545 (0x221), region = 32  ;;  %s1415_s22 = sand.u32 (!%p1362_p8), 1, %s1281_s13  }
  0x2a   : > { %s853_s24 = sshll.u32 (!%p1362_p8), %s1415_s22, 4  ;;  %s187_s25 = scalar_lea.sflag (!%p1362_p8), [#allocation8], %s1415_s22 }
  0x2b   : > { %s190_s30 = scalar_lea.vmem (!%p1362_p8), [#allocation7], %s853_s24 }
  0x2e   : > { %1264 = dma.done.wait (%p1349_p4), %s187_s25, 256  }
  0x2f   : > { %1266 = vsyncadd (%p1349_p4), %s187_s25, 4294967040 }
  0x30   : > { %1268 = dma.done.wait (%p41_p1), [#allocation11], 4608  }
  0x31   : > { %1270 = vsyncadd (%p41_p1), [#allocation11], 4294962688  ;;  %vm225_vm0 = vcmask 516096   ;;  %v1297_v0 = vmov 0.0   ;;  %v1019_v1 = vld [vmem:[#allocation10 + $0x38] sm:$0xff]  ;;  %v1018_v4 = vld [vmem:[#allocation10 + $0x30] sm:$0xff] }
  0x32   : > { %227 = vst.msk [vmem:[#allocation2 + $0x9] sm:$0x1] %vm225_vm0, %v1297_v0  ;;  %v1015_v2 = vld [vmem:[#allocation10 + $0x18] sm:$0xff]  ;;  %300 = vmatpush.bf16.msra.mxu0 %v1019_v1  ;;  %v1014_v5 = vld [vmem:[#allocation10 + $0x10] sm:$0xff]  ;;  %vm235_vm1 = vcmask 523264   ;;  %v1017_v9 = vld [vmem:[#allocation10 + $0x28] sm:$0xff] }
  0x33   : > { %228 = vst.msk [vmem:[#allocation2 + $0xa] sm:$0x1] %vm225_vm0, %v1297_v0  ;;  %v1023_v3 = vld [vmem:[#allocation10 + $0x58] sm:$0xff]  ;;  %348 = vmatpush.bf16.msra.mxu1 %v1015_v2  ;;  %v1022_v6 = vld [vmem:[#allocation10 + $0x50] sm:$0xff]  ;;  %v1013_v10 = vld [vmem:[#allocation10 + $0x8] sm:$0xff]  ;;  %s1298_s18 = smov 64  }
  0x34   : > { %226 = vst.msk [vmem:[#allocation2] sm:$0x1] %vm225_vm0, %v1297_v0  ;;  %410 = vmatpush.bf16.msra.mxu2 %v1023_v3  ;;  %v234_v7 = vld [vmem:[%s190_s30] sm:$0xff]  ;;  %v237_v8 = vld [vmem:[%s190_s30 + $0x8] sm:$0xff]  ;;  %s856_s23 = sshll.u32 %s1415_s22, 2  ;;  %s1008_s26 = sshll.u32 %s1340_s16, 2 }
  0x35   : > { %229 = vst.msk [vmem:[#allocation2 + $0x13] sm:$0x1] %vm225_vm0, %v1297_v0  ;;  %v1021_v11 = vld [vmem:[#allocation10 + $0x48] sm:$0xff]  ;;  %v1016_v12 = vld [vmem:[#allocation10 + $0x20] sm:$0xff]  ;;  %v1039_v30 = vld [vmem:[#allocation12 + $0x78] sm:$0xff]  ;;  %s750_s29 = scalar_lea.hbm %s1472_s3, %s1008_s26  ;;  %s223_s4 = scalar_lea.vmem [#allocation13], %s856_s23 }
  0x36   : > { %230 = vst [vmem:[#allocation4] sm:$0x1] %v1297_v0  ;;  %301 = vmatpush.bf16.msra.mxu0 %v1018_v4  ;;  %v1012_v13 = vld [vmem:[#allocation10] sm:$0xff]  ;;  %v1031_v31 = vld [vmem:[#allocation12 + $0x38] sm:$0xff]  ;;  %531 = vmatpush.bf16.msra.mxu3 %v1039_v30  ;;  %v1038_v33 = vld [vmem:[#allocation12 + $0x70] sm:$0xff]  ;;  %s752_s5 = sshll.u32 %s223_s4, 4  ;;  %s753_s5 = int_to_ptr.vmem [resolvable:$true] %s752_s5 }
  0x37   : > { %231 = vst [vmem:[#allocation4 + $0x9] sm:$0x1] %v1297_v0  ;;  %349 = vmatpush.bf16.msra.mxu1 %v1014_v5  ;;  %v1020_v14 = vld [vmem:[#allocation10 + $0x40] sm:$0xff]  ;;  %v1047_v32 = vld [vmem:[#allocation12 + $0xb8] sm:$0xff]  ;;  %v1030_v34 = vld [vmem:[#allocation12 + $0x30] sm:$0xff]  ;;  %s754_s7 = sshll.u32 %s750_s29, 4  ;;  %s755_s7 = int_to_ptr.hbm [resolvable:$true] %s754_s7 }
  0x38   : > { %232 = vst [vmem:[#allocation4 + $0xa] sm:$0x1] %v1297_v0  ;;  %411 = vmatpush.bf16.msra.mxu2 %v1022_v6  ;;  %v1046_v35 = vld [vmem:[#allocation12 + $0xb0] sm:$0xff]  ;;  %v1037_v36 = vld [vmem:[#allocation12 + $0x68] sm:$0xff]  ;;  %v1036_v39 = vld [vmem:[#allocation12 + $0x60] sm:$0xff]  ;;  %s740_s8 = scalar_lea.sflag [#allocation9], %s1415_s22 }
  0x39   : > { %233 = vst [vmem:[#allocation4 + $0x13] sm:$0x1] %v1297_v0  ;;  %v1029_v37 = vld [vmem:[#allocation12 + $0x28] sm:$0xff]  ;;  %v1028_v40 = vld [vmem:[#allocation12 + $0x20] sm:$0xff]  ;;  %v1035_v42 = vld [vmem:[#allocation12 + $0x58] sm:$0xff]  ;;  %s1233_s17 = sshra.s32 %s755_s7, 4  ;;  %s1234_s17 = int_to_ptr.hbm [resolvable:$true] %s1233_s17 }
  0x3a   : > { %236 = vst.msk [vmem:[#allocation2 + $0x1] sm:$0xff] %vm235_vm1, %v234_v7  ;;  %302 = vmatpush.bf16.msra.mxu0 %v1017_v9  ;;  %532 = vmatpush.bf16.msra.mxu3 %v1038_v33  ;;  %v1045_v38 = vld [vmem:[#allocation12 + $0xa8] sm:$0xff]  ;;  %v1044_v41 = vld [vmem:[#allocation12 + $0xa0] sm:$0xff]  ;;  %v1027_v43 = vld [vmem:[#allocation12 + $0x18] sm:$0xff]  ;;  %s1235_s16 = scalar_lea.hbm %s1234_s17, 4  ;;  %s1239_s21 = scalar_lea.hbm %s1472_s3, 8 }
  0x3b   : > { %238 = vst.msk [vmem:[#allocation2 + $0xb] sm:$0xff] %vm235_vm1, %v237_v8  ;;  %350 = vmatpush.bf16.msra.mxu1 %v1013_v10  ;;  %v1043_v44 = vld [vmem:[#allocation12 + $0x98] sm:$0xff]  ;;  %v1034_v47 = vld [vmem:[#allocation12 + $0x50] sm:$0xff]  ;;  %v1033_v51 = vld [vmem:[#allocation12 + $0x48] sm:$0xff]  ;;  %p1236_p1 = scmp.ne.s32.totalorder %s1234_s17, %s1235_s16  ;;  %p1240_p11 = scmp.lt.s32.totalorder %s1234_s17, %s1472_s3 }
  0x3c   : > { %412 = vmatpush.bf16.msra.mxu2 %v1021_v11  ;;  %v1026_v48 = vld [vmem:[#allocation12 + $0x10] sm:$0xff]  ;;  %v1025_v52 = vld [vmem:[#allocation12 + $0x8] sm:$0xff]  ;;  %v1032_v58 = vld [vmem:[#allocation12 + $0x40] sm:$0xff]  ;;  %p1241_p2 = scmp.lt.s32.totalorder %s1239_s21, %s1235_s16 }
  0x3d   : > { %v1042_v49 = vld [vmem:[#allocation12 + $0x90] sm:$0xff]  ;;  %v1041_v53 = vld [vmem:[#allocation12 + $0x88] sm:$0xff]  ;;  %v1024_v59 = vld [vmem:[#allocation12] sm:$0xff]  ;;  %p1237_p4 = pnand %p1236_p1, %p1385_p3 }
  0x3e   : > { %303 = vmatpush.bf16.msra.mxu0 %v1016_v12  ;;  %533 = vmatpush.bf16.msra.mxu3 %v1037_v36  ;;  %v1040_v61 = vld [vmem:[#allocation12 + $0x80] sm:$0xff]  ;;  %p1242_p9 = por %p1241_p2, %p1240_p11 }
  0x3f   : > { %351 = vmatpush.bf16.msra.mxu1 %v1012_v13  ;;  %p1238_p8 = pneg %p1237_p4 }
  0x40   : > { %413 = vmatpush.bf16.msra.mxu2 %v1020_v14 }
  0x41   : > { %v252_v15 = vld [vmem:[#allocation2 + $0x1] sm:$0xff]  ;;  %p1243_p10 = pnand %p1242_p9, %p1238_p8 }
  0x42   : > { %v239_v16 = vld [vmem:[#allocation2] sm:$0xff]  ;;  %v253_v18 = vld [vmem:[#allocation2 + $0x9] sm:$0xff]  ;;  %v254_v24 = vld [vmem:[#allocation2 + $0x11] sm:$0x3]  ;;  %597 = vmatpush.bf16.msrb.mxu0 %v1031_v31  ;;  %534 = vmatpush.bf16.msra.mxu3 %v1036_v39 }
  0x43   : > { %v362_v17 = vld [vmem:[#allocation2 + $0x2] sm:$0xff]  ;;  %v363_v20 = vld [vmem:[#allocation2 + $0xa] sm:$0xff]  ;;  %v255_v21 = vpack.c.bf16 %v253_v18, %v252_v15  ;;  %v364_v26 = vld [vmem:[#allocation2 + $0x12] sm:$0x3]  ;;  %v256_v27 = vpack.c.bf16 %v254_v24, %v254_v24  ;;  %685 = vmatpush.bf16.msrb.mxu1 %v1047_v32 }
  0x44   : > { %v240_v19 = vld [vmem:[#allocation2 + $0x8] sm:$0xff]  ;;  %v365_v23 = vpack.c.bf16 %v363_v20, %v362_v17  ;;  %v241_v25 = vld [vmem:[#allocation2 + $0x10] sm:$0x3]  ;;  %v366_v29 = vpack.c.bf16 %v364_v26, %v364_v26  ;;  %1048 = vmatpush.bf16.msrb.mxu2 %v1031_v31 }
  0x45   : > { %v242_v22 = vpack.c.bf16 %v240_v19, %v239_v16  ;;  %873 = vmatmul.msk.bf16.vlgmr.msra.gmra.mxu0 %vm235_vm1, %v255_v21  ;;  %v243_v28 = vpack.c.bf16 %v241_v25, %v241_v25 }
  0x46   : > { %909 = vmatmul.msk.bf16.vlgmr.msra.gmra.mxu2 %vm235_vm1, %v365_v23  ;;  %598 = vmatpush.bf16.msrb.mxu0 %v1030_v34 }
  0x47   : > { %891 = vmatmul.msk.bf16.vlgmr.msra.gmra.mxu1 %vm235_vm1, %v242_v22  ;;  %535 = vmatpush.bf16.msra.mxu3 %v1035_v42 }
  0x48   : > { %1049 = vmatpush.bf16.msrb.mxu2 %v1030_v34  ;;  %686 = vmatpush.bf16.msrb.mxu1 %v1046_v35 }
  0x4a   : > { %599 = vmatpush.bf16.msrb.mxu0 %v1029_v37 }
  0x4b   : > { %536 = vmatpush.bf16.msra.mxu3 %v1034_v47 }
  0x4c   : > { %1050 = vmatpush.bf16.msrb.mxu2 %v1029_v37  ;;  %687 = vmatpush.bf16.msrb.mxu1 %v1045_v38 }
  0x4e   : > { %600 = vmatpush.bf16.msrb.mxu0 %v1028_v40 }
  0x4f   : > { %537 = vmatpush.bf16.msra.mxu3 %v1033_v51 }
  0x50   : > { %1051 = vmatpush.bf16.msrb.mxu2 %v1028_v40  ;;  %688 = vmatpush.bf16.msrb.mxu1 %v1044_v41 }
  0x52   : > { %601 = vmatpush.bf16.msrb.mxu0 %v1027_v43 }
  0x53   : > { %538 = vmatpush.bf16.msra.mxu3 %v1032_v58 }
  0x54   : > { %1052 = vmatpush.bf16.msrb.mxu2 %v1027_v43  ;;  %689 = vmatpush.bf16.msrb.mxu1 %v1043_v44 }
  0x55   : > { %874 = vmatmul.msk.bf16.gmra.mxu0 %vm235_vm1, %v256_v27 }
  0x56   : > { %910 = vmatmul.msk.bf16.gmra.mxu2 %vm235_vm1, %v366_v29  ;;  %602 = vmatpush.bf16.msrb.mxu0 %v1026_v48 }
  0x57   : > { %892 = vmatmul.msk.bf16.gmra.mxu1 %vm235_vm1, %v243_v28 }
  0x58   : > { %1053 = vmatpush.bf16.msrb.mxu2 %v1026_v48  ;;  %690 = vmatpush.bf16.msrb.mxu1 %v1042_v49 }
  0x5a   : > { %603 = vmatpush.bf16.msrb.mxu0 %v1025_v52 }
  0x5c   : > { %1054 = vmatpush.bf16.msrb.mxu2 %v1025_v52  ;;  %691 = vmatpush.bf16.msrb.mxu1 %v1041_v53 }
  0x5e   : > { %604 = vmatpush.bf16.msrb.mxu0 %v1024_v59 }
  0x60   : > { %1055 = vmatpush.bf16.msrb.mxu2 %v1024_v59  ;;  %692 = vmatpush.bf16.msrb.mxu1 %v1040_v61  ;;  %v719_v61 = vlaneseq }
  0xc2   : > { %v305_v45 = vpop.f32.mrf.mxu0 }
  0xc4   : > { %v353_v46 = vpop.f32.mrf.mxu1 }
  0xc5   : > { %v354_v50 = vadd.f32 %v353_v46, %v305_v45 }
  0xc9   : > { %v415_v54 = vpop.f32.mrf.mxu2 }
  0xca   : > { %v424_v55 = vadd.f32 %v415_v54, %v354_v50  ;;  %v307_v56 = vpop.f32.mrf.mxu0 }
  0xcc   : > { %v355_v57 = vpop.f32.mrf.mxu1  ;;  %v427_v60 = vmul.f32 0.01, %v424_v55 }
  0xcd   : > { %v356_v63 = vadd.f32 %v355_v57, %v307_v56 }
  0xce   : > { %v430_v62 = vmax.f32 %v424_v55, %v427_v60 }
  0xd0   : > { %437 = vst [vmem:[#allocation4 + $0x1] sm:$0xff] %v430_v62 }
  0xd1   : > { %v417_v0 = vpop.f32.mrf.mxu2 }
  0xd2   : > { %v425_v1 = vadd.f32 %v417_v0, %v356_v63  ;;  %v310_v2 = vpop.f32.mrf.mxu0 }
  0xd4   : > { %v358_v3 = vpop.f32.mrf.mxu1  ;;  %v428_v4 = vmul.f32 0.01, %v425_v1 }
  0xd5   : > { %v359_v6 = vadd.f32 %v358_v3, %v310_v2 }
  0xd6   : > { %v431_v5 = vmax.f32 %v425_v1, %v428_v4 }
  0xd7   : > { %v440_v15 = vld [vmem:[#allocation4] sm:$0xff] }
  0xd8   : > { %434 = vst [vmem:[#allocation3 + $0x8] sm:$0xff] %v431_v5  ;;  %v615_v22 = vld [vmem:[#allocation4 + $0x2] sm:$0xff] }
  0xd9   : > { %v420_v7 = vpop.f32.mrf.mxu2 }
  0xda   : > { %v426_v8 = vadd.f32 %v420_v7, %v359_v6  ;;  %v312_v9 = vpop.f32.mrf.mxu0 }
  0xdc   : > { %v360_v10 = vpop.f32.mrf.mxu1  ;;  %v429_v11 = vmul.f32 0.01, %v426_v8 }
  0xde   : > { %v432_v12 = vmax.f32 %v426_v8, %v429_v11 }
  0xe0   : > { %435 = vst [vmem:[#allocation3 + $0x10] sm:$0x3] %v432_v12 }
  0xe1   : > { %v422_v13 = vpop.f32.mrf.mxu2 }
  0xe7   : > { %v438_v14 = vld [vmem:[#allocation3 + $0xa] sm:$0xff] }
  0xe8   : > { %439 = vst [vmem:[#allocation4 + $0xb] sm:$0xff] %v438_v14 }
  0xef   : > { %v462_v16 = vld [vmem:[#allocation4 + $0x9] sm:$0xff]  ;;  %v463_v25 = vld [vmem:[#allocation4 + $0x11] sm:$0x3] }
  0xf0   : > { %v441_v17 = vld [vmem:[#allocation4 + $0x8] sm:$0xff]  ;;  %v442_v18 = vld [vmem:[#allocation4 + $0x10] sm:$0x3]  ;;  %v464_v19 = vpack.c.bf16 %v462_v16, %v430_v62  ;;  %v617_v26 = vld [vmem:[#allocation4 + $0x12] sm:$0x3]  ;;  %v465_v27 = vpack.c.bf16 %v463_v25, %v463_v25  ;;  %v720_v62 = vand.u32 127, %v719_v61 }
  0xf1   : > { %v443_v20 = vpack.c.bf16 %v441_v17, %v440_v15  ;;  %v444_v21 = vpack.c.bf16 %v442_v18, %v442_v18  ;;  %v616_v23 = vld [vmem:[#allocation4 + $0xa] sm:$0xff]  ;;  %v619_v28 = vpack.c.bf16 %v617_v26, %v617_v26 }
  0xf2   : > { %v618_v24 = vpack.c.bf16 %v616_v23, %v615_v22  ;;  %539 = vmatmul.bf16.vlgmr.msra.gmra.mxu3 %v464_v19  ;;  %vm721_vm2 = vcmp.lt.s32.totalorder %v720_v62, 64 }
  0xf3   : > { %605 = vmatmul.bf16.vlgmr.msrb.gmra.mxu0 %v443_v20  ;;  %610 = vmatmul.bf16.vlgmr.msrb.gmra.mxu2 %v444_v21 }
  0xf4   : > { %693 = vmatmul.bf16.vlgmr.msrb.gmra.mxu1 %v618_v24 }
 0x102   : > { %544 = vmatmul.bf16.gmra.mxu3 %v465_v27 }
 0x104   : > { %698 = vmatmul.bf16.gmra.mxu1 %v619_v28 }
 0x170   : > { %v606_v30 = vpop.f32.mrf.mxu0 }
 0x171   : > { %v694_v29 = vpop.f32.mrf.mxu1 }
 0x175   : > { %v540_v31 = vpop.f32.mrf.mxu3 }
 0x176   : > { %v607_v32 = vadd.f32 %v606_v30, %v540_v31  ;;  %v611_v33 = vpop.f32.mrf.mxu2 }
 0x178   : > { %v703_v34 = vadd.f32 %v694_v29, %v607_v32  ;;  %v608_v38 = vpop.f32.mrf.mxu0 }
 0x179   : > { %v696_v35 = vpop.f32.mrf.mxu1 }
 0x17a   : > { %v706_v36 = vmul.f32 0.01, %v703_v34 }
 0x17c   : > { %v709_v37 = vmax.f32 %v703_v34, %v706_v36 }
 0x17d   : > { %v542_v39 = vpop.f32.mrf.mxu3 }
 0x17e   : > { %v609_v40 = vadd.f32 %v608_v38, %v542_v39  ;;  %v613_v41 = vpop.f32.mrf.mxu2  ;;  %716 = vst [vmem:[#allocation6] sm:$0xff] %v709_v37 }
 0x180   : > { %v704_v42 = vadd.f32 %v696_v35, %v609_v40 }
 0x181   : > { %v699_v43 = vpop.f32.mrf.mxu1 }
 0x182   : > { %v707_v44 = vmul.f32 0.01, %v704_v42 }
 0x184   : > { %v710_v45 = vmax.f32 %v704_v42, %v707_v44 }
 0x185   : > { %v545_v46 = vpop.f32.mrf.mxu3 }
 0x186   : > { %713 = vst [vmem:[#allocation5 + $0x8] sm:$0xff] %v710_v45  ;;  %v612_v47 = vadd.f32 %v611_v33, %v545_v46 }
 0x188   : > { %v705_v48 = vadd.f32 %v699_v43, %v612_v47 }
 0x189   : > { %v701_v49 = vpop.f32.mrf.mxu1 }
 0x18a   : > { %v708_v50 = vmul.f32 0.01, %v705_v48 }
 0x18c   : > { %v711_v51 = vmax.f32 %v705_v48, %v708_v50 }
 0x18d   : > { %v547_v52 = vpop.f32.mrf.mxu3 }
 0x18e   : > { %714 = vst [vmem:[#allocation5 + $0x10] sm:$0x3] %v711_v51 }
 0x195   : > { %v717_v53 = vld [vmem:[#allocation5 + $0xa] sm:$0xff] }
 0x196   : > { %718 = vst [vmem:[#allocation6 + $0x8] sm:$0xff] %v717_v53 }
 0x19d   : > { %v722_v54 = vld [vmem:[#allocation6] ss:$4 sm:$0xf]  ;;  %v724_v55 = vld [vmem:[#allocation6 + $0x1] ss:$4 sm:$0xf] }
 0x19e   : > { %v729_v56 = vmax.f32 %v722_v54, %v724_v55  ;;  %v726_v57 = vld [vmem:[#allocation6 + $0x2] ss:$4 sm:$0xf]  ;;  %v728_v58 = vld [vmem:[#allocation6 + $0x3] ss:$4 sm:$0xf] }
 0x19f   : > { %v730_v59 = vmax.f32 %v726_v57, %v728_v58 }
 0x1a0   : > { %731 = vrot.lane.b32.xlu0 %v729_v56, %s1298_s18 }
 0x1a8   : > { %734 = vrot.lane.b32.xlu0 %v730_v59, %s1298_s18 }
 0x212   : > { %v732_v60 = vpop.permute.xlu0 %731 }
 0x213   : > { %v733_v0 = vmax.f32 %v729_v56, %v732_v60 }
 0x21a   : > { %v735_v63 = vpop.permute.xlu0 %734 }
 0x21b   : > { %v736_v1 = vmax.f32 %v730_v59, %v735_v63 }
 0x21d   : > { %v737_v2 = vsel %vm721_vm2, %v733_v0, %v736_v1 }
 0x21e   : > { %738 = vst [vmem:[%s223_s4] sm:$0xf] %v737_v2 }
 0x21f   : > { %1246 = shalt.err (!%p1243_p10)
}
 0x220   : > { %1066 = dma.vmem_to_hbm [thread:$0]  (%p1385_p3), %s753_s5, 64, %s755_s7, %s740_s8  }
 0x221 PF: > { %s766_s22 = sand.u32 1, %s1277_s12   ;;  %p1478_p12 = scmp.ge.s32.totalorder %s1289_s15, 2 }
 0x222   : > { %s767_s30 = scalar_lea.sflag [#allocation9], %s766_s22 }
 0x223   : > { %p1080_p13 = pnand %p1478_p12, %p1354_p6 }
 0x225   : > { %p1081_p0 = pneg %p1080_p13 }
 0x227   : > { %1272 = dma.done.wait (%p1081_p0), %s767_s30, 64  }
 0x228   : > { %1274 = vsyncadd (%p1081_p0), %s767_s30, 4294967232  ;;  %p17_p5 = scmp.ge.s32.totalorder %s1375_s6, 4   ;;  %s1479_s12 = smov %s1281_s13 }
 0x229   : > { %s1480_s13 = smov %s1285_s14  ;;  %s1481_s14 = smov %s1391_s10 }
 0x22a   : > { %s1482_s15 = smov %s1375_s6  ;;  %19 = sbr.rel (!%p17_p5) target bundleno = 6 (0x6), region = 92 }
 0x22f   :  { %773 = vsyncpa [#allocation8], 1 }
 0x230   :  { %775 = vsyncpa [#allocation8 + $0x1], 1 }
 0x231   :  { %776 = vsyncpa [#allocation11], 1 }
 0x232   :  { %777 = vsyncpa [#allocation9], 1 }
 0x233   :  { %779 = vsyncpa [#allocation9 + $0x1], 1 }

</bundles_post_ra>
